<compile_context>
chip_gen: v7x
topology: tpu7x:2x2x1
jax: 0.10.0
libtpu: 0.0.40
codegen_flags: <defaults>
</compile_context>

<pallas_src>
import functools

import jax
import jax.numpy as jnp
from jax.experimental import pallas as pl
from jax.experimental.pallas import tpu as pltpu

EPS = 1e-07


def _loss_terms(yp, yt, inv_p, inv_t):
    """Per-element KLD terms: yt_n * log(yt_n / (yp_n + eps) + eps)."""
    yp_n = yp * inv_p
    yt_n = yt * inv_t
    # Exact reciprocal (approx=False) keeps the per-element ratio within ~1 ulp
    # of the reference divide; this path feeds a log and is accuracy-sensitive
    # for the 1e-5/1e-6 tolerance.  See module-level TODO for the v7x variant.
    ratio = yt_n * pl.reciprocal(yp_n + EPS)
    return yt_n * jnp.log(ratio + EPS)


def _kld_row_loss_kernel(yp_ref, yt_ref, loss_ref):
    """Single pass: one full-width row tile -> per-row partial losses."""
    yp = yp_ref[...].astype(jnp.float32)
    yt = yt_ref[...].astype(jnp.float32)
    # Per-row spatial sums -> one exact reciprocal per row + one mul per element
    # instead of a broadcast divide.
    inv_p = pl.reciprocal(jnp.sum(yp, axis=-1, keepdims=True) + EPS)
    inv_t = pl.reciprocal(jnp.sum(yt, axis=-1, keepdims=True) + EPS)
    loss_ref[...] = jnp.sum(_loss_terms(yp, yt, inv_p, inv_t),
                            axis=-1, keepdims=True)


def _row_sums_kernel(yp_ref, yt_ref, sp_ref, st_ref, *, cols, tc):
    """Two-pass / pass 1: accumulate per-row spatial sums over column tiles."""
    j = pl.program_id(1)

    @pl.when(j == 0)
    def _init():
        sp_ref[...] = jnp.zeros_like(sp_ref)
        st_ref[...] = jnp.zeros_like(st_ref)

    yp = yp_ref[...].astype(jnp.float32)
    yt = yt_ref[...].astype(jnp.float32)
    if cols % tc != 0:  # mask unspecified data in the padded tail column block
        cmask = jax.lax.broadcasted_iota(jnp.int32, yp.shape, 1) < (cols - j * tc)
        yp = jnp.where(cmask, yp, 0.0)
        yt = jnp.where(cmask, yt, 0.0)
    sp_ref[...] += jnp.sum(yp, axis=-1, keepdims=True)
    st_ref[...] += jnp.sum(yt, axis=-1, keepdims=True)


def _col_tiled_loss_kernel(inv_p_ref, inv_t_ref, yp_ref, yt_ref, loss_ref,
                           *, cols, tc):
    """Two-pass / pass 2: accumulate per-row losses over column tiles."""
    j = pl.program_id(1)

    @pl.when(j == 0)
    def _init():
        loss_ref[...] = jnp.zeros_like(loss_ref)

    yp = yp_ref[...].astype(jnp.float32)
    yt = yt_ref[...].astype(jnp.float32)
    if cols % tc != 0:
        cmask = jax.lax.broadcasted_iota(jnp.int32, yp.shape, 1) < (cols - j * tc)
        # Masked columns contribute exactly 0: yt_n = yp_n = 0 -> 0 * log(eps).
        yp = jnp.where(cmask, yp, 0.0)
        yt = jnp.where(cmask, yt, 0.0)
    loss_ref[...] += jnp.sum(
        _loss_terms(yp, yt, inv_p_ref[...], inv_t_ref[...]),
        axis=-1, keepdims=True)


def _vmem_budget_bytes():
    """~75% of this generation's physical VMEM, leaving Mosaic headroom."""
    try:
        cap = getattr(pltpu.get_tpu_info(), "vmem_capacity_bytes", 64 * 2**20)
    except Exception:
        cap = 64 * 2**20  # conservative (v7x-sized) fallback
    return max(32 * 2**20, int(cap) * 3 // 4)


def kld_loss(y_pred, y_true, size_average=True, *, _force_two_pass=False):
    """Pallas equivalent of KLDLoss.forward. Inputs are NCHW (f32 or bf16)."""
    assert y_pred.ndim == 4 and y_true.shape == y_pred.shape
    n, c, h, w = y_pred.shape
    rows, cols = n * c, h * w

    itemsize = y_pred.dtype.itemsize
    row_align = 8 * (4 // itemsize)           # 8 rows for f32, 16 for bf16
    budget = _vmem_budget_bytes()
    # 2 inputs x 2 pipeline buffers + ~6 live f32 elementwise intermediates.
    live_factor = 6 + 4 * (4 // itemsize)
    tile_budget = budget // live_factor

    yp2 = y_pred.reshape(rows, cols)
    yt2 = y_true.reshape(rows, cols)

    row_bytes = cols * itemsize
    tr = (tile_budget // row_bytes) // row_align * row_align
    if tr == 0 and rows * row_bytes <= tile_budget:
        tr = rows                              # tiny-rows case: one full block fits
    # Keep >=2 row blocks when rows allow it so both v7x TensorCores get work.
    half_rows = pl.cdiv(pl.cdiv(rows, 2), row_align) * row_align

    if tr > 0 and not _force_two_pass:
        # ---------- single pass: full-width row tiles, data read exactly once ----
        tr = min(tr, 1024 if budget >= 72 * 2**20 else 512, half_rows)
        if tr >= rows:
            tr = rows            # full-extent row block (exempt from the 8-row rule)
        nr = pl.cdiv(rows, tr)

        per_row = pl.pallas_call(
            _kld_row_loss_kernel,
            out_shape=jax.ShapeDtypeStruct((rows, 1), jnp.float32),
            grid_spec=pltpu.PrefetchScalarGridSpec(
                num_scalar_prefetch=0,
                grid=(nr,),
                in_specs=[
                    pl.BlockSpec((tr, cols), lambda i: (i, 0)),
                    pl.BlockSpec((tr, cols), lambda i: (i, 0)),
                ],
                out_specs=pl.BlockSpec((tr, 1), lambda i: (i, 0)),
            ),
            compiler_params=pltpu.CompilerParams(
                dimension_semantics=("parallel",),
                vmem_limit_bytes=budget,
            ),
        )(yp2, yt2)
    else:
        # ---------- two passes with column tiling: very large H*W --------------
        tr2 = (2 * row_align) if _force_two_pass else 256
        tr2 = min(tr2, half_rows)
        if tr2 >= rows:
            tr2 = rows
        per_tile = min(tile_budget * 3 // 4, 8 * 2**20)
        tc = max(128, (per_tile // (tr2 * itemsize)) // 128 * 128)
        if _force_two_pass:
            tc = 128                            # testing hook: force column blocking
        if tc >= cols:
            tc = cols
        nr = pl.cdiv(rows, tr2)
        nc = pl.cdiv(cols, tc)
        # TODO(synk): when nr == 1 the "parallel" row axis gives no megacore
        # parallelism on v7x; splitting the column reduction across cores would
        # need per-core partial accumulators.

        sums_p, sums_t = pl.pallas_call(
            functools.partial(_row_sums_kernel, cols=cols, tc=tc),
            out_shape=(jax.ShapeDtypeStruct((rows, 1), jnp.float32),
                       jax.ShapeDtypeStruct((rows, 1), jnp.float32)),
            grid_spec=pltpu.PrefetchScalarGridSpec(
                num_scalar_prefetch=0,
                grid=(nr, nc),
                in_specs=[
                    pl.BlockSpec((tr2, tc), lambda i, j: (i, j)),
                    pl.BlockSpec((tr2, tc), lambda i, j: (i, j)),
                ],
                out_specs=[
                    pl.BlockSpec((tr2, 1), lambda i, j: (i, 0)),
                    pl.BlockSpec((tr2, 1), lambda i, j: (i, 0)),
                ],
            ),
            compiler_params=pltpu.CompilerParams(
                dimension_semantics=("parallel", "arbitrary"),
                vmem_limit_bytes=budget,
            ),
        )(yp2, yt2)

        # Tiny (rows, 1) per-row reciprocals stay in plain JAX.
        inv_p = 1.0 / (sums_p + EPS)
        inv_t = 1.0 / (sums_t + EPS)

        per_row = pl.pallas_call(
            functools.partial(_col_tiled_loss_kernel, cols=cols, tc=tc),
            out_shape=jax.ShapeDtypeStruct((rows, 1), jnp.float32),
            grid_spec=pltpu.PrefetchScalarGridSpec(
                num_scalar_prefetch=0,
                grid=(nr, nc),
                in_specs=[
                    pl.BlockSpec((tr2, 1), lambda i, j: (i, 0)),
                    pl.BlockSpec((tr2, 1), lambda i, j: (i, 0)),
                    pl.BlockSpec((tr2, tc), lambda i, j: (i, j)),
                    pl.BlockSpec((tr2, tc), lambda i, j: (i, j)),
                ],
                out_specs=pl.BlockSpec((tr2, 1), lambda i, j: (i, 0)),
            ),
            compiler_params=pltpu.CompilerParams(
                dimension_semantics=("parallel", "arbitrary"),
                vmem_limit_bytes=budget,
            ),
        )(inv_p, inv_t, yp2, yt2)

    total = jnp.sum(per_row)
    # size_average = mean over the N*C maps; done in the wrapper so the kernel
    # body is identical across grid steps.
    return total / rows if size_average else total


def kld_loss_ref(y_pred, y_true, size_average=True):
    """Pure-JAX reference mirroring the PyTorch module."""
    sum_t = jnp.sum(y_true, axis=(2, 3), keepdims=True)
    sum_p = jnp.sum(y_pred, axis=(2, 3), keepdims=True)
    yp = y_pred / (sum_p + EPS)
    yt = y_true / (sum_t + EPS)
    loss = jnp.sum(yt * jnp.log(yt / (yp + EPS) + EPS), axis=(2, 3))
    return jnp.mean(loss) if size_average else jnp.sum(loss)


if __name__ == "__main__":
    key = jax.random.PRNGKey(0)
    shapes = [
        (2, 4, 16, 16),   # rows=8,  cols=256: aligned, single row block
        (6, 4, 16, 16),   # rows=24, cols=256: partial tail row block
        (2, 3, 12, 20),   # rows=6,  cols=240: non-128 cols (full-dim blocks)
    ]
    for shape in shapes:
        key, k1, k2 = jax.random.split(key, 3)
        y_pred = jax.nn.softplus(jax.random.normal(k1, shape, jnp.float32))
        y_true = jax.nn.softplus(jax.random.normal(k2, shape, jnp.float32))
        for force_two_pass in (False, True):
            for size_average in (True, False):
                out = jax.block_until_ready(
                    kld_loss(y_pred, y_true, size_average,
                             _force_two_pass=force_two_pass))
                ref = kld_loss_ref(y_pred, y_true, size_average)
                assert jnp.allclose(out, ref, rtol=1e-5, atol=1e-6), (
                    shape, force_two_pass, size_average, float(out), float(ref))
    print("KERNEL_OK")
</pallas_src>

<mosaic_0001>
module attributes {stable_mosaic.version = 11 : i64} {
  func.func @_kld_row_loss_kernel(%arg0: i32, %arg1: memref<8x256xf32, #tpu.memory_space<vmem>>, %arg2: memref<8x256xf32, #tpu.memory_space<vmem>>, %arg3: memref<8x1xf32, #tpu.memory_space<vmem>>) attributes {dimension_semantics = [#tpu.dimension_semantics<parallel>], iteration_bounds = array<i64: 1>, scalar_prefetch = 0 : i64, scratch_operands = 0 : i64, tpu.core_type = #tpu.core_type<tc>, window_params = [{transform_indices = @transform_0, window_bounds = array<i64: 8, 256>}, {transform_indices = @transform_1, window_bounds = array<i64: 8, 256>}, {transform_indices = @transform_2, window_bounds = array<i64: 8, 1>}]} {
    %c0 = arith.constant 0 : index
    %c0_0 = arith.constant 0 : index
    %0 = vector.load %arg1[%c0, %c0_0] : memref<8x256xf32, #tpu.memory_space<vmem>>, vector<8x256xf32>
    %c0_1 = arith.constant 0 : index
    %c0_2 = arith.constant 0 : index
    %1 = vector.load %arg2[%c0_1, %c0_2] : memref<8x256xf32, #tpu.memory_space<vmem>>, vector<8x256xf32>
    %cst = arith.constant dense<0.000000e+00> : vector<8xf32>
    %2 = vector.multi_reduction <add>, %0, %cst [1] : vector<8x256xf32> to vector<8xf32>
    %3 = vector.shape_cast %2 : vector<8xf32> to vector<8x1xf32>
    %cst_3 = arith.constant 1.000000e-07 : f32
    %4 = vector.broadcast %cst_3 : f32 to vector<8x1xf32>
    %5 = arith.addf %3, %4 : vector<8x1xf32>
    %6 = tpu.reciprocal %5 : vector<8x1xf32> -> vector<8x1xf32>
    %cst_4 = arith.constant dense<0.000000e+00> : vector<8xf32>
    %7 = vector.multi_reduction <add>, %1, %cst_4 [1] : vector<8x256xf32> to vector<8xf32>
    %8 = vector.shape_cast %7 : vector<8xf32> to vector<8x1xf32>
    %cst_5 = arith.constant 1.000000e-07 : f32
    %9 = vector.broadcast %cst_5 : f32 to vector<8x1xf32>
    %10 = arith.addf %8, %9 : vector<8x1xf32>
    %11 = tpu.reciprocal %10 : vector<8x1xf32> -> vector<8x1xf32>
    %12 = vector.broadcast %6 : vector<8x1xf32> to vector<8x256xf32>
    %13 = arith.mulf %0, %12 : vector<8x256xf32>
    %14 = vector.broadcast %11 : vector<8x1xf32> to vector<8x256xf32>
    %15 = arith.mulf %1, %14 : vector<8x256xf32>
    %cst_6 = arith.constant 1.000000e-07 : f32
    %16 = vector.broadcast %cst_6 : f32 to vector<8x256xf32>
    %17 = arith.addf %13, %16 : vector<8x256xf32>
    %18 = tpu.reciprocal %17 : vector<8x256xf32> -> vector<8x256xf32>
    %19 = arith.mulf %15, %18 : vector<8x256xf32>
    %cst_7 = arith.constant 1.000000e-07 : f32
    %20 = vector.broadcast %cst_7 : f32 to vector<8x256xf32>
    %21 = arith.addf %19, %20 : vector<8x256xf32>
    %22 = math.log %21 : vector<8x256xf32>
    %23 = arith.mulf %15, %22 : vector<8x256xf32>
    %cst_8 = arith.constant dense<0.000000e+00> : vector<8xf32>
    %24 = vector.multi_reduction <add>, %23, %cst_8 [1] : vector<8x256xf32> to vector<8xf32>
    %25 = vector.shape_cast %24 : vector<8xf32> to vector<8x1xf32>
    %c0_9 = arith.constant 0 : index
    %c0_10 = arith.constant 0 : index
    %26 = vector.load %arg3[%c0_9, %c0_10] : memref<8x1xf32, #tpu.memory_space<vmem>>, vector<8x1xf32>
    tpu.vector_store %arg3[%c0_9, %c0_10], %25 {strides = array<i32>} : memref<8x1xf32, #tpu.memory_space<vmem>>, vector<8x1xf32>,
    return
  }
  func.func @transform_0(%arg0: i32) -> (i32, i32) {
    %c0_i32 = arith.constant 0 : i32
    %c0_i32_0 = arith.constant 0 : i32
    return %arg0, %c0_i32 : i32, i32
  }
  func.func @transform_1(%arg0: i32) -> (i32, i32) {
    %c0_i32 = arith.constant 0 : i32
    %c0_i32_0 = arith.constant 0 : i32
    return %arg0, %c0_i32 : i32, i32
  }
  func.func @transform_2(%arg0: i32) -> (i32, i32) {
    %c0_i32 = arith.constant 0 : i32
    %c0_i32_0 = arith.constant 0 : i32
    return %arg0, %c0_i32 : i32, i32
  }
}

</mosaic_0001>

<bundles_post_ra>
// kernel: tpu_custom_call.1
= control target key start
LH: loop header
LB: loop body
LE: loop exit
PB: predicated region body
PF: predicated region fallthrough
CT: control target
= control target key end

     0   :  { %7 = vsyncpa [#allocation3], 0  ;;  %s184_s0 = inlined_call_operand.hbm [shape: f32[8,256], index: 0, kind: input, shape index: {}]   ;;  %s185_s1 = inlined_call_operand.hbm [shape: f32[8,256], index: 1, kind: input, shape index: {}]   ;;  %s186_s2 = inlined_call_operand.vmem [shape: f32[8,1], index: 2, kind: output, shape index: {}]  }
   0x1   :  { %8 = vsyncpa [#allocation5], 0  ;;  %s140_s9 = smov [#allocation2]   ;;  %s141_s11 = smov [#allocation4]  }
   0x2   :  { %s15_s10 = sshll.u32 %s140_s9, 4  ;;  %s25_s12 = sshll.u32 %s141_s11, 4  ;;  %s16_s10 = int_to_ptr.vmem [resolvable:$true] %s15_s10  ;;  %s26_s12 = int_to_ptr.vmem [resolvable:$true] %s25_s12 }
   0x3   :  { %s92_s15 = scalar_lea.hbm %s184_s0, 256 }
   0x4   :  { %p93_p0 = scmp.ne.s32.totalorder %s184_s0, %s92_s15  ;;  %p96_p1 = scmp.lt.u32.totalorder %s92_s15, %s184_s0 }
   0x6   :  { %p98_p2 = pnand %p96_p1, %p93_p0 }
   0x8   :  { %101 = shalt.err (!%p98_p2)
}
   0x9   :  { %s102_s20 = scalar_lea.vmem %s16_s10, 256  ;;  %p107_p4 = scmp.lt.s32.totalorder %s16_s10, %s16_s10 }
   0xa   :  { %p103_p3 = scmp.ne.s32.totalorder %s16_s10, %s102_s20  ;;  %p108_p5 = scmp.lt.s32.totalorder %s102_s20, %s102_s20 }
   0xc   :  { %p109_p6 = por %p108_p5, %p107_p4 }
   0xe   :  { %p110_p7 = pnand %p109_p6, %p103_p3 }
  0x10   :  { %113 = shalt.err (!%p110_p7)
}
  0x11   :  { %18 = dma.hbm_to_vmem [thread:$0]  %s184_s0, 256, %s16_s10, [#allocation3]  }
  0x12   :  { %s114_s25 = scalar_lea.hbm %s185_s1, 256 }
  0x13   :  { %p115_p8 = scmp.ne.s32.totalorder %s185_s1, %s114_s25  ;;  %p118_p9 = scmp.lt.u32.totalorder %s114_s25, %s185_s1 }
  0x15   :  { %p120_p10 = pnand %p118_p9, %p115_p8 }
  0x17   :  { %123 = shalt.err (!%p120_p10)
}
  0x18   :  { %s124_s30 = scalar_lea.vmem %s26_s12, 256  ;;  %p129_p12 = scmp.lt.s32.totalorder %s26_s12, %s26_s12 }
  0x19   :  { %p125_p11 = scmp.ne.s32.totalorder %s26_s12, %s124_s30  ;;  %p130_p13 = scmp.lt.s32.totalorder %s124_s30, %s124_s30 }
  0x1b   :  { %p131_p0 = por %p130_p13, %p129_p12 }
  0x1d   :  { %p132_p1 = pnand %p131_p0, %p125_p11 }
  0x1f   :  { %135 = shalt.err (!%p132_p1)
}
  0x20   :  { %28 = dma.hbm_to_vmem [thread:$0]  %s185_s1, 256, %s26_s12, [#allocation5]  }
  0x21   :  { %136 = dma.done.wait [#allocation3], 256  }
  0x22   :  { %137 = vsyncadd [#allocation3], 4294967040 }
  0x23   :  { %138 = dma.done.wait [#allocation5], 256  }
  0x24   :  { %139 = vsyncadd [#allocation5], 4294967040  ;;  %v35_v0 = vld [vmem:[#allocation2] sm:$0xff]  ;;  %v36_v1 = vld [vmem:[#allocation2 + $0x8] sm:$0xff]  ;;  %vm70_vm0 = vcmask 7168  }
  0x25   :  { %v37_v2 = vld [vmem:[#allocation4] sm:$0xff]  ;;  %v39_v3 = vadd.f32 %v36_v1, %v35_v0  ;;  %v38_v4 = vld [vmem:[#allocation4 + $0x8] sm:$0xff] }
  0x26   :  { %v44_v5 = vadd.f32 %v38_v4, %v37_v2 }
  0x27   :  { %40 = vadd.xlane.f32.xlu0 %v39_v3 }
  0x2b   :  { %45 = vadd.xlane.f32.xlu0 %v44_v5 }
  0xb4   :  { %v41_v6 = vpop.xlane.xlu0 %40 }
  0xb5   :  { %v42_v7 = vadd.f32 1e-07, %v41_v6 }
  0xb7   :  { %80 = vrcp.f32 %v42_v7 }
  0xb8   :  { %v46_v8 = vpop.xlane.xlu0 %45 }
  0xb9   :  { %v47_v9 = vadd.f32 1e-07, %v46_v8 }
  0xbb   :  { %82 = vrcp.f32 %v47_v9 }
  0xc1   :  { %v81_v10 = vpop.eup %80 }
  0xc2   :  { %v49_v11 = vmul.f32 %v81_v10, %v35_v0  ;;  %v50_v12 = vmul.f32 %v81_v10, %v36_v1 }
  0xc4   :  { %v53_v13 = vadd.f32 1e-07, %v49_v11  ;;  %v54_v14 = vadd.f32 1e-07, %v50_v12 }
  0xc5   :  { %v83_v15 = vpop.eup %82 }
  0xc6   :  { %84 = vrcp.f32 %v53_v13  ;;  %v51_v16 = vmul.f32 %v83_v15, %v37_v2  ;;  %v52_v17 = vmul.f32 %v83_v15, %v38_v4 }
  0xc7   :  { %86 = vrcp.f32 %v54_v14 }
  0xd0   :  { %v85_v18 = vpop.eup %84 }
  0xd1   :  { %v87_v19 = vpop.eup %86  ;;  %v57_v20 = vmul.f32 %v85_v18, %v51_v16 }
  0xd2   :  { %v58_v21 = vmul.f32 %v87_v19, %v52_v17 }
  0xd3   :  { %v59_v22 = vadd.f32 1e-07, %v57_v20 }
  0xd4   :  { %v60_v23 = vadd.f32 1e-07, %v58_v21 }
  0xd5   :  { %88 = vlog2.f32 %v59_v22 }
  0xd6   :  { %90 = vlog2.f32 %v60_v23 }
  0xdf   :  { %v89_v24 = vpop.eup %88 }
  0xe0   :  { %v91_v25 = vpop.eup %90  ;;  %v62_v26 = vmul.f32 0.6931472, %v89_v24 }
  0xe1   :  { %v64_v27 = vmul.f32 0.6931472, %v91_v25 }
  0xe2   :  { %v65_v28 = vmul.f32 %v62_v26, %v51_v16 }
  0xe3   :  { %v66_v29 = vmul.f32 %v64_v27, %v52_v17 }
  0xe5   :  { %v67_v30 = vadd.f32 %v66_v29, %v65_v28 }
  0xe7   :  { %68 = vadd.xlane.f32.xlu1 %v67_v30 }
 0x174   :  { %v69_v31 = vpop.xlane.xlu1 %68 }
 0x175   :  { %71 = vst.msk [vmem:[%s186_s2] sm:$0xff] %vm70_vm0, %v69_v31 }
 0x176   :  { %76 = vsyncpa [#allocation3], 1 }
 0x177   :  { %77 = vsyncpa [#allocation5], 1 }

</bundles_post_ra>
